<compile_context>
chip_gen: v5e
topology: v5e:2x2
jax: 0.10.0
libtpu: 0.0.40
codegen_flags: <defaults>
</compile_context>

<pallas_src>
import jax
import jax.numpy as jnp
from jax.experimental import pallas as pl
from jax.experimental.pallas import tpu as pltpu


def plr_integrand_kernel(params_ref, tprime_ref, out_ref):
    # params_ref lives in SMEM: [t, c, ng] with
    #   c  = log(v*E0) + gamma*log(t0)
    #   ng = -gamma
    t = params_ref[0]
    c = params_ref[1]
    ng = params_ref[2]
    # v*E0*((t - t')/t0)**(-gamma) == exp(c + ng*log(t - t'))
    # Matches torch.pow semantics for (t - t') > 0; NaN for (t - t') < 0,
    # +inf for (t - t') == 0 — same as the PyTorch module.
    out_ref[...] = jnp.exp(c + ng * jnp.log(t - tprime_ref[...]))


def plr_forward(t_prime, t, t0, v, E0, gamma, *,
                max_tile_bytes=4 * 1024 * 1024):
    """Runs the PLRmodel Integrand on a 2-D f32 array t_prime [M, N]."""
    t_prime = jnp.asarray(t_prime, jnp.float32)
    M, N = t_prime.shape

    # Hoist all scalar algebra out of the per-element path.
    t = jnp.float32(t)
    t0 = jnp.float32(t0)
    v = jnp.float32(v)
    E0 = jnp.float32(E0)
    gamma = jnp.float32(gamma)
    c = jnp.log(v * E0) + gamma * jnp.log(t0)
    params = jnp.stack([t, c, -gamma]).astype(jnp.float32)

    # Tile only M; keep the full N in the lane axis (lane-dense output).
    row_bytes = N * 4
    if M * row_bytes <= max_tile_bytes or M <= 8:
        tm = M                                  # single full-array block
    else:
        tm = max(8, min(M, max_tile_bytes // row_bytes))
        tm = (tm // 8) * 8                      # sublane-aligned
    grid_m = pl.cdiv(M, tm)

    return pl.pallas_call(
        plr_integrand_kernel,
        out_shape=jax.ShapeDtypeStruct((M, N), jnp.float32),
        grid=(grid_m,),
        in_specs=[
            pl.BlockSpec(memory_space=pltpu.SMEM),       # scalar params
            pl.BlockSpec((tm, N), lambda i: (i, 0)),     # t_prime tile
        ],
        out_specs=pl.BlockSpec((tm, N), lambda i: (i, 0)),
        compiler_params=pltpu.CompilerParams(
            dimension_semantics=("parallel",),
            # 2 double-buffered (in + out) 4 MiB tiles ~= 16 MiB resident;
            # 32 MiB is safe on all of v5e (128 MiB phys), v6e (128), v7x (64).
            vmem_limit_bytes=32 * 1024 * 1024,
        ),
    )(params, t_prime)


# TODO(synk): PLR_Integration (Trapezoid / quad / rquad) is not runnable in the
# reference source (undefined symbols, never invoked) — only the Integrand
# expression is implemented here.

if __name__ == "__main__":
    # Deterministic parameter init matching PLRmodel.__init__:
    #   t0 = 1.0, t_max = 0.2 (unused in forward), v = 10.0, E0 = 572.0,
    #   gamma = 0.42, and the constructor argument t (choose t = 1.0).
    t_val, t0_val, v_val, E0_val, gamma_val = 1.0, 1.0, 10.0, 572.0, 0.42

    key = jax.random.PRNGKey(0)
    k1, k2 = jax.random.split(key)

    def ref_fn(tp):
        return v_val * E0_val * ((t_val - tp) / t0_val) ** (-gamma_val)

    # Case 1: small input — exercises the single-block (no per-step overhead)
    # fast path.  Keep (t - t_prime) > 0 so the fractional power is real.
    M, N = 16, 256
    t_prime = jax.random.uniform(k1, (M, N), dtype=jnp.float32,
                                 minval=0.0, maxval=0.5)
    out = jax.block_until_ready(
        plr_forward(t_prime, t_val, t0_val, v_val, E0_val, gamma_val))
    assert out.shape == (M, N) and out.dtype == jnp.float32
    assert jnp.allclose(out, ref_fn(t_prime), rtol=1e-4, atol=1e-3)

    # Case 2: force the tiled multi-block path (small max_tile_bytes) to cover
    # the grid/index_map logic at small shapes.
    M2, N2 = 64, 256
    t_prime2 = jax.random.uniform(k2, (M2, N2), dtype=jnp.float32,
                                  minval=0.0, maxval=0.5)
    out2 = jax.block_until_ready(
        plr_forward(t_prime2, t_val, t0_val, v_val, E0_val, gamma_val,
                    max_tile_bytes=16 * 1024))
    assert out2.shape == (M2, N2) and out2.dtype == jnp.float32
    assert jnp.allclose(out2, ref_fn(t_prime2), rtol=1e-4, atol=1e-3)

    print("KERNEL_OK")
</pallas_src>

<mosaic_0001>
module attributes {stable_mosaic.version = 11 : i64} {
  func.func @plr_integrand_kernel(%arg0: i32, %arg1: memref<3xf32, #tpu.memory_space<smem>>, %arg2: memref<16x256xf32, #tpu.memory_space<vmem>>, %arg3: memref<16x256xf32, #tpu.memory_space<vmem>>) attributes {dimension_semantics = [#tpu.dimension_semantics<parallel>], iteration_bounds = array<i64: 1>, scalar_prefetch = 0 : i64, scratch_operands = 0 : i64, tpu.core_type = #tpu.core_type<tc>, window_params = [{transform_indices = @transform_0, window_bounds = array<i64: 3>}, {transform_indices = @transform_1, window_bounds = array<i64: 16, 256>}, {transform_indices = @transform_2, window_bounds = array<i64: 16, 256>}]} {
    %c0 = arith.constant 0 : index
    %0 = memref.load %arg1[%c0] : memref<3xf32, #tpu.memory_space<smem>>
    %c1 = arith.constant 1 : index
    %1 = memref.load %arg1[%c1] : memref<3xf32, #tpu.memory_space<smem>>
    %c2 = arith.constant 2 : index
    %2 = memref.load %arg1[%c2] : memref<3xf32, #tpu.memory_space<smem>>
    %c0_0 = arith.constant 0 : index
    %c0_1 = arith.constant 0 : index
    %3 = vector.load %arg2[%c0_0, %c0_1] : memref<16x256xf32, #tpu.memory_space<vmem>>, vector<16x256xf32>
    %4 = vector.broadcast %0 : f32 to vector<16x256xf32>
    %5 = arith.subf %4, %3 : vector<16x256xf32>
    %6 = math.log %5 : vector<16x256xf32>
    %7 = vector.broadcast %2 : f32 to vector<16x256xf32>
    %8 = arith.mulf %7, %6 : vector<16x256xf32>
    %9 = vector.broadcast %1 : f32 to vector<16x256xf32>
    %10 = arith.addf %9, %8 : vector<16x256xf32>
    %11 = math.exp %10 : vector<16x256xf32>
    %c0_2 = arith.constant 0 : index
    %c0_3 = arith.constant 0 : index
    %12 = vector.load %arg3[%c0_2, %c0_3] : memref<16x256xf32, #tpu.memory_space<vmem>>, vector<16x256xf32>
    tpu.vector_store %arg3[%c0_2, %c0_3], %11 {strides = array<i32>} : memref<16x256xf32, #tpu.memory_space<vmem>>, vector<16x256xf32>,
    return
  }
  func.func @transform_0(%arg0: i32) -> i32 {
    %c0_i32 = arith.constant 0 : i32
    %c0_i32_0 = arith.constant 0 : i32
    return %c0_i32 : i32
  }
  func.func @transform_1(%arg0: i32) -> (i32, i32) {
    %c0_i32 = arith.constant 0 : i32
    %c0_i32_0 = arith.constant 0 : i32
    return %arg0, %c0_i32 : i32, i32
  }
  func.func @transform_2(%arg0: i32) -> (i32, i32) {
    %c0_i32 = arith.constant 0 : i32
    %c0_i32_0 = arith.constant 0 : i32
    return %arg0, %c0_i32 : i32, i32
  }
}

</mosaic_0001>

<bundles_post_ra>
// kernel: tpu_custom_call.1
= control target key start
LH: loop header
LB: loop body
LE: loop exit
PB: predicated region body
PF: predicated region fallthrough
CT: control target
= control target key end

     0   :  { %7 = vsyncpa [#allocation5], 0  ;;  %s227_s0 = inlined_call_operand.hbm [shape: f32[3], index: 0, kind: input, shape index: {}]   ;;  %s228_s1 = inlined_call_operand.hbm [shape: f32[16,256], index: 1, kind: input, shape index: {}]   ;;  %s229_s2 = inlined_call_operand.hbm [shape: f32[16,256], index: 2, kind: output, shape index: {}]  }
   0x1   :  { %8 = vsyncpa [#allocation3], 0 }
   0x2   :  { %9 = vsyncpa [#allocation4], 0  ;;  %s15_s11 = sshll.u32 %s227_s0, 4  ;;  %s23_s14 = sshll.u32 %s228_s1, 4  ;;  %s16_s11 = int_to_ptr.hbm [resolvable:$true] %s15_s11  ;;  %s24_s14 = int_to_ptr.hbm [resolvable:$true] %s23_s14 }
   0x3   :  { %s192_s15 = smov [#allocation2]   ;;  %s193_s16 = smov [#allocation6]  }
   0x4   :  { %18 = dma.hbm_to_smem %s16_s11, 16, %s192_s15, [#allocation5]  }
   0x5   :  { %s25_s17 = sshll.u32 %s193_s16, 4  ;;  %s194_s18 = smov 256   ;;  %s26_s17 = int_to_ptr.vmem [resolvable:$true] %s25_s17 }
   0x6   :  { %s195_s19 = smov 16  }
   0x7   :  { %31 = dma.hbm_to_vmem [thread:$0]  %s24_s14, 512, %s26_s17, [#allocation3], %s194_s18, %s194_s18, %s195_s19  }
   0x8   :  { %186 = dma.done.wait [#allocation5], 16  }
   0x9   :  { %187 = vsyncadd [#allocation5], 4294967280 }
   0xa   :  { %188 = dma.done.wait [#allocation3], 512  }
   0xb   :  { %189 = vsyncadd [#allocation3], 4294966784 }
   0xc   :  { %40 = sfence }
   0xd   :  { %s41_s0 = sld [smem:[#allocation2]]  ;;  %v44_v0 = vld [vmem:[#allocation6] sm:$0xff]  ;;  %v45_v1 = vld [vmem:[#allocation6 + $0x8] sm:$0xff]  ;;  %v46_v2 = vld [vmem:[#allocation6 + $0x10] sm:$0xff]  ;;  %s196_s21 = smov [#allocation7]  }
   0xe   :  { %v47_v3 = vld [vmem:[#allocation6 + $0x18] sm:$0xff]  ;;  %s104_s1 = sld [smem:[#allocation2 + $0x2]]  ;;  %s87_s22 = sshll.u32 %s196_s21, 4  ;;  %s88_s22 = int_to_ptr.vmem [resolvable:$true] %s87_s22 }
   0xf   :  { %s103_s20 = sld [smem:[#allocation2 + $0x1]]  ;;  %s89_s25 = sshll.u32 %s229_s2, 4  ;;  %s90_s25 = int_to_ptr.hbm [resolvable:$true] %s89_s25 }
  0x13   :  { %v48_v4 = vstv %s41_s0 }
  0x14   :  { %v49_v5 = vsub.f32 %v48_v4, %v44_v0  ;;  %v50_v6 = vsub.f32 %v48_v4, %v45_v1  ;;  %v51_v7 = vsub.f32 %v48_v4, %v46_v2  ;;  %v52_v8 = vsub.f32 %v48_v4, %v47_v3 }
  0x15   :  { %v61_v10 = vstv %s104_s1  ;;  %v66_v14 = vstv %s103_s20 }
  0x16   :  { %110 = vlog2.f32 %v49_v5 }
  0x17   :  { %112 = vlog2.f32 %v50_v6 }
  0x18   :  { %114 = vlog2.f32 %v51_v7 }
  0x19   :  { %116 = vlog2.f32 %v52_v8 }
  0x1c   :  { %v111_v9 = vpop.eup %110 }
  0x1d   :  { %v113_v11 = vpop.eup %112  ;;  %v54_v12 = vmul.f32 0.6931472, %v111_v9 }
  0x1e   :  { %v115_v13 = vpop.eup %114  ;;  %v56_v15 = vmul.f32 0.6931472, %v113_v11 }
  0x1f   :  { %v117_v16 = vpop.eup %116  ;;  %v62_v17 = vmul.f32 %v61_v10, %v54_v12  ;;  %v58_v18 = vmul.f32 0.6931472, %v115_v13 }
  0x20   :  { %v63_v19 = vmul.f32 %v61_v10, %v56_v15  ;;  %v60_v20 = vmul.f32 0.6931472, %v117_v16 }
  0x21   :  { %v67_v21 = vadd.f32 %v66_v14, %v62_v17  ;;  %v64_v22 = vmul.f32 %v61_v10, %v58_v18 }
  0x22   :  { %v68_v23 = vadd.f32 %v66_v14, %v63_v19  ;;  %v65_v24 = vmul.f32 %v61_v10, %v60_v20 }
  0x23   :  { %v71_v25 = vmul.f32 1.442695, %v67_v21  ;;  %v69_v26 = vadd.f32 %v66_v14, %v64_v22 }
  0x24   :  { %v73_v27 = vmul.f32 1.442695, %v68_v23  ;;  %v70_v28 = vadd.f32 %v66_v14, %v65_v24 }
  0x25   :  { %118 = vpow2.f32 %v71_v25  ;;  %v75_v29 = vmul.f32 1.442695, %v69_v26 }
  0x26   :  { %120 = vpow2.f32 %v73_v27  ;;  %v77_v30 = vmul.f32 1.442695, %v70_v28 }
  0x27   :  { %122 = vpow2.f32 %v75_v29 }
  0x28   :  { %124 = vpow2.f32 %v77_v30 }
  0x2b   :  { %v119_v31 = vpop.eup %118 }
  0x2c   :  { %v121_v32 = vpop.eup %120  ;;  %79 = vst [vmem:[#allocation7] sm:$0xff] %v119_v31 }
  0x2d   :  { %v123_v33 = vpop.eup %122  ;;  %80 = vst [vmem:[#allocation7 + $0x8] sm:$0xff] %v121_v32 }
  0x2e   :  { %v125_v34 = vpop.eup %124  ;;  %81 = vst [vmem:[#allocation7 + $0x10] sm:$0xff] %v123_v33 }
  0x2f   :  { %82 = vst [vmem:[#allocation7 + $0x18] sm:$0xff] %v125_v34 }
  0x30   :  { %95 = dma.vmem_to_hbm [thread:$0]  %s88_s22, 512, %s90_s25, [#allocation4], %s194_s18, %s194_s18, %s195_s19  }
  0x31   :  { %190 = dma.done.wait [#allocation4], 512  }
  0x32   :  { %191 = vsyncadd [#allocation4], 4294966784 }
  0x33   :  { %100 = vsyncpa [#allocation3], 1 }
  0x34   :  { %101 = vsyncpa [#allocation4], 1 }
  0x35   :  { %102 = vsyncpa [#allocation5], 1 }

</bundles_post_ra>
